<compile_context>
chip_gen: v6e
topology: v6e:2x2x1
jax: 0.10.0
libtpu: 0.0.40
codegen_flags: <defaults>
</compile_context>

<pallas_src>
import functools

import jax
import jax.numpy as jnp
from jax.experimental import pallas as pl
from jax.experimental.pallas import tpu as pltpu

LANE = 128
SUBLANE = 8
MAX_TILE_L = 32768                    # lane cap (v7x-safe footprint)
VMEM_BUDGET_BYTES = 12 * 1024 * 1024  # target double-buffered pass-2 footprint
VMEM_LIMIT_BYTES = 32 * 1024 * 1024   # scoped VMEM limit (safe on v5e/v6e/v7x)


def _round_up(x, m):
    return ((x + m - 1) // m) * m


def _stats_kernel(x_ref, g_ref, s_ref, *, tile_l, rag):
    """Accumulate per-batch Gram matrix G = X X^T and row-sums s of x.

    x_ref: (C_in, tile_l) tile of the current batch element.
    g_ref: (C_in, C_in) accumulator (this batch element's partial).
    s_ref: (C_in, 1) accumulator.
    """
    j = pl.program_id(1)

    @pl.when(j == 0)
    def _init():
        g_ref[...] = jnp.zeros_like(g_ref)
        s_ref[...] = jnp.zeros_like(s_ref)

    def accumulate(xv):
        # Contract over the lane axis of both operands (Q.K^T-style dot),
        # avoiding any explicit transpose/relayout of the big tile.
        g_ref[...] += jax.lax.dot_general(
            xv, xv, (((1,), (1,)), ((), ())),
            preferred_element_type=jnp.float32)
        s_ref[...] += jnp.sum(xv, axis=1, keepdims=True)

    if rag > 0:
        # Masking only runs on the ragged last L-tile (OOB lanes of a partial
        # block are unspecified, so they must be zeroed before accumulation).
        last = pl.num_programs(1) - 1

        @pl.when(j != last)
        def _full():
            accumulate(x_ref[...])

        @pl.when(j == last)
        def _ragged():
            xv = x_ref[...]
            col = jax.lax.broadcasted_iota(jnp.int32, xv.shape, 1)
            accumulate(jnp.where(col < (tile_l - rag), xv, 0.0))
    else:
        accumulate(x_ref[...])


def _fused_conv_bn_relu_kernel(w_ref, b_ref, x_ref, o_ref):
    """out = relu(W' @ x + b') with BatchNorm folded into W', b'.

    Ragged last tile: out-of-bounds x columns only feed out-of-bounds output
    columns, which Pallas discards on writeback, so no masking is needed.
    """
    y = jnp.dot(w_ref[...], x_ref[...], preferred_element_type=jnp.float32)
    o_ref[...] = jnp.maximum(y + b_ref[...], 0.0)


def conv_module_1d(x, weight, bias, gamma, beta, eps=1e-5,
                   max_tile_l=MAX_TILE_L,
                   vmem_budget_bytes=VMEM_BUDGET_BYTES):
    """Pallas forward of ConvModule1d: relu(batchnorm(conv1d_k1(x))).

    x:      (N, C_in, L) float32
    weight: (C_out, C_in, 1) conv kernel (kernel size 1)
    bias:   (C_out,)
    gamma, beta: (C_out,) BatchNorm affine parameters
    Returns (N, C_out, L) float32.
    """
    N, C_in, L = x.shape
    C_out = weight.shape[0]
    M = N * L

    x = x.astype(jnp.float32)
    w2 = weight.astype(jnp.float32).reshape(C_out, C_in)

    # ---- tile size: as many lanes per step as the VMEM budget allows --------
    c_in_p = _round_up(C_in, SUBLANE)
    c_out_p = _round_up(C_out, SUBLANE)
    bytes_per_lane = 2 * (c_in_p + c_out_p) * 4    # double-buffered x + out, f32
    tile_l = max(LANE, (vmem_budget_bytes // bytes_per_lane) // LANE * LANE)
    tile_l = min(tile_l, max_tile_l)
    if L <= tile_l:
        tile_l = L                     # single full-length tile, no ragged tail
    num_l_tiles = pl.cdiv(L, tile_l)
    rag = num_l_tiles * tile_l - L     # padded lanes in the last L-tile

    # ---- pass 1: per-batch partial Gram / row-sum of x ----------------------
    g_partial, s_partial = pl.pallas_call(
        functools.partial(_stats_kernel, tile_l=tile_l, rag=rag),
        out_shape=(jax.ShapeDtypeStruct((N, C_in, C_in), jnp.float32),
                   jax.ShapeDtypeStruct((N, C_in, 1), jnp.float32)),
        grid_spec=pl.GridSpec(
            grid=(N, num_l_tiles),
            in_specs=[
                pl.BlockSpec((None, C_in, tile_l), lambda n, j: (n, 0, j)),
            ],
            out_specs=(
                pl.BlockSpec((None, C_in, C_in), lambda n, j: (n, 0, 0)),
                pl.BlockSpec((None, C_in, 1), lambda n, j: (n, 0, 0)),
            )),
        compiler_params=pltpu.CompilerParams(
            dimension_semantics=("parallel", "arbitrary"),
            vmem_limit_bytes=VMEM_LIMIT_BYTES),
    )(x)

    # ---- wrapper: tiny (C_in/C_out-sized) statistics math --------------------
    G = jnp.sum(g_partial, axis=0)            # (C_in, C_in) second moment of x
    s = jnp.sum(s_partial, axis=0)[:, 0]      # (C_in,) first moment of x
    mean = (w2 @ s) / M                       # mean_c(W @ x)
    e2 = jnp.sum((w2 @ G) * w2, axis=1) / M   # E[(W @ x)^2] per out channel
    var = jnp.maximum(e2 - mean * mean, 0.0)  # biased variance (BN uses biased)
    scale = gamma.astype(jnp.float32) * jax.lax.rsqrt(var + eps)
    # Batch-stat BN makes the conv bias cancel exactly:
    #   (Wx + b) - (mean_Wx + b) = Wx - mean_Wx  ->  fold scale/shift into W, b'.
    shift = beta.astype(jnp.float32) - scale * mean
    del bias  # mathematically cancels under training-mode BatchNorm

    w_f = w2 * scale[:, None]                 # (C_out, C_in)
    b_f = shift.reshape(C_out, 1)             # (C_out, 1)

    # ---- pass 2: fused conv(1x1) + folded BN + ReLU --------------------------
    out = pl.pallas_call(
        _fused_conv_bn_relu_kernel,
        out_shape=jax.ShapeDtypeStruct((N, C_out, L), jnp.float32),
        grid_spec=pl.GridSpec(
            grid=(N, num_l_tiles),
            in_specs=[
                pl.BlockSpec((C_out, C_in), lambda n, j: (0, 0)),
                pl.BlockSpec((C_out, 1), lambda n, j: (0, 0)),
                pl.BlockSpec((None, C_in, tile_l), lambda n, j: (n, 0, j)),
            ],
            out_specs=pl.BlockSpec((None, C_out, tile_l),
                                   lambda n, j: (n, 0, j))),
        compiler_params=pltpu.CompilerParams(
            dimension_semantics=("parallel", "parallel"),
            vmem_limit_bytes=VMEM_LIMIT_BYTES),
    )(w_f, b_f, x)

    return out


def _reference(x, weight, bias, gamma, beta, eps=1e-5):
    """Pure-JAX forward: conv1d(k=1) -> BatchNorm1d (batch stats) -> ReLU."""
    w = weight.reshape(weight.shape[0], weight.shape[1]).astype(jnp.float32)
    y = jnp.einsum('oc,ncl->nol', w, x.astype(jnp.float32))
    y = y + bias[None, :, None]
    mean = jnp.mean(y, axis=(0, 2))
    var = jnp.var(y, axis=(0, 2))             # biased, as BN normalization uses
    yn = (y - mean[None, :, None]) * jax.lax.rsqrt(var + eps)[None, :, None]
    yn = yn * gamma[None, :, None] + beta[None, :, None]
    return jnp.maximum(yn, 0.0)


if __name__ == "__main__":
    key = jax.random.PRNGKey(0)
    kx, kw, kb, kg, kbe = jax.random.split(key, 5)

    # Small shapes consistent with the module: batch=2, in_feat=4, out_feat=32,
    # seq length 200.
    N, C_in, C_out, L = 2, 4, 32, 200

    x = jax.random.uniform(kx, (N, C_in, L), dtype=jnp.float32)
    weight = jax.random.normal(kw, (C_out, C_in, 1), dtype=jnp.float32) * 0.3
    bias = jax.random.normal(kb, (C_out,), dtype=jnp.float32) * 0.1
    gamma = 1.0 + 0.2 * jax.random.normal(kg, (C_out,), dtype=jnp.float32)
    beta = 0.1 * jax.random.normal(kbe, (C_out,), dtype=jnp.float32)

    ref = _reference(x, weight, bias, gamma, beta)

    # Default path: one full-length L tile per batch element.
    out = conv_module_1d(x, weight, bias, gamma, beta)
    jax.block_until_ready(out)
    assert out.shape == (N, C_out, L), out.shape
    assert jnp.allclose(out, ref, rtol=1e-3, atol=1e-3), (
        float(jnp.max(jnp.abs(out - ref))))

    # Small-tile path: exercises the multi-tile grid and the ragged last
    # L-tile masking / write-discard paths at small sizes.
    out_t = conv_module_1d(x, weight, bias, gamma, beta, max_tile_l=128)
    jax.block_until_ready(out_t)
    assert jnp.allclose(out_t, ref, rtol=1e-3, atol=1e-3), (
        float(jnp.max(jnp.abs(out_t - ref))))

    # TODO(synk): BatchNorm running_mean/running_var momentum updates are a
    # training-time buffer side effect with no influence on the returned
    # tensor; not implemented.
    print("KERNEL_OK")
</pallas_src>

<mosaic_0001>
module attributes {stable_mosaic.version = 11 : i64} {
  func.func @_stats_kernel(%arg0: i32, %arg1: i32, %arg2: memref<1x4x200xf32, #tpu.memory_space<vmem>>, %arg3: memref<1x4x4xf32, #tpu.memory_space<vmem>>, %arg4: memref<1x4x1xf32, #tpu.memory_space<vmem>>) attributes {dimension_semantics = [#tpu.dimension_semantics<parallel>, #tpu.dimension_semantics<arbitrary>], iteration_bounds = array<i64: 2, 1>, scalar_prefetch = 0 : i64, scratch_operands = 0 : i64, tpu.core_type = #tpu.core_type<tc>, window_params = [{transform_indices = @transform_0, window_bounds = array<i64: 1, 4, 200>}, {transform_indices = @transform_1, window_bounds = array<i64: 1, 4, 4>}, {transform_indices = @transform_2, window_bounds = array<i64: 1, 4, 1>}]} {
    %c0_i32 = arith.constant 0 : i32
    %0 = arith.cmpi eq, %arg1, %c0_i32 : i32
    %1 = arith.extui %0 : i1 to i32
    %c0_i32_0 = arith.constant 0 : i32
    %2 = arith.cmpi ne, %1, %c0_i32_0 : i32
    scf.if %2 {
      %cst_16 = arith.constant 0.000000e+00 : f32
      %20 = vector.broadcast %cst_16 : f32 to vector<4x4xf32>
      %c0_17 = arith.constant 0 : index
      %c0_18 = arith.constant 0 : index
      %c0_19 = arith.constant 0 : index
      %21 = vector.load %arg3[%c0_17, %c0_18, %c0_19] : memref<1x4x4xf32, #tpu.memory_space<vmem>>, vector<1x4x4xf32>
      %22 = vector.shape_cast %21 : vector<1x4x4xf32> to vector<4x4xf32>
      %23 = vector.shape_cast %20 : vector<4x4xf32> to vector<1x4x4xf32>
      tpu.vector_store %arg3[%c0_17, %c0_18, %c0_19], %23 {strides = array<i32>} : memref<1x4x4xf32, #tpu.memory_space<vmem>>, vector<1x4x4xf32>,
      %cst_20 = arith.constant 0.000000e+00 : f32
      %24 = vector.broadcast %cst_20 : f32 to vector<4x1xf32>
      %c0_21 = arith.constant 0 : index
      %c0_22 = arith.constant 0 : index
      %c0_23 = arith.constant 0 : index
      %25 = vector.load %arg4[%c0_21, %c0_22, %c0_23] : memref<1x4x1xf32, #tpu.memory_space<vmem>>, vector<1x4x1xf32>
      %26 = vector.shape_cast %25 : vector<1x4x1xf32> to vector<4x1xf32>
      %27 = vector.shape_cast %24 : vector<4x1xf32> to vector<1x4x1xf32>
      tpu.vector_store %arg4[%c0_21, %c0_22, %c0_23], %27 {strides = array<i32>} : memref<1x4x1xf32, #tpu.memory_space<vmem>>, vector<1x4x1xf32>,
    } else {
    }
    %c0 = arith.constant 0 : index
    %c0_1 = arith.constant 0 : index
    %c0_2 = arith.constant 0 : index
    %3 = vector.load %arg2[%c0, %c0_1, %c0_2] : memref<1x4x200xf32, #tpu.memory_space<vmem>>, vector<1x4x200xf32>
    %4 = vector.shape_cast %3 : vector<1x4x200xf32> to vector<4x200xf32>
    %c0_3 = arith.constant 0 : index
    %c0_4 = arith.constant 0 : index
    %c0_5 = arith.constant 0 : index
    %5 = vector.load %arg3[%c0_3, %c0_4, %c0_5] : memref<1x4x4xf32, #tpu.memory_space<vmem>>, vector<1x4x4xf32>
    %6 = vector.shape_cast %5 : vector<1x4x4xf32> to vector<4x4xf32>
    %cst = arith.constant dense<0.000000e+00> : vector<4x4xf32>
    %7 = tpu.matmul %4, %4, %cst {dimension_numbers = #tpu.dot_dimension_numbers<[1], [1], [0], [0], [0, 0, 1, 0], [], []>} : vector<4x200xf32>, vector<4x200xf32>, vector<4x4xf32> -> vector<4x4xf32>
    %8 = arith.addf %6, %7 : vector<4x4xf32>
    %c0_6 = arith.constant 0 : index
    %c0_7 = arith.constant 0 : index
    %c0_8 = arith.constant 0 : index
    %9 = vector.load %arg3[%c0_6, %c0_7, %c0_8] : memref<1x4x4xf32, #tpu.memory_space<vmem>>, vector<1x4x4xf32>
    %10 = vector.shape_cast %9 : vector<1x4x4xf32> to vector<4x4xf32>
    %11 = vector.shape_cast %8 : vector<4x4xf32> to vector<1x4x4xf32>
    tpu.vector_store %arg3[%c0_6, %c0_7, %c0_8], %11 {strides = array<i32>} : memref<1x4x4xf32, #tpu.memory_space<vmem>>, vector<1x4x4xf32>,
    %c0_9 = arith.constant 0 : index
    %c0_10 = arith.constant 0 : index
    %c0_11 = arith.constant 0 : index
    %12 = vector.load %arg4[%c0_9, %c0_10, %c0_11] : memref<1x4x1xf32, #tpu.memory_space<vmem>>, vector<1x4x1xf32>
    %13 = vector.shape_cast %12 : vector<1x4x1xf32> to vector<4x1xf32>
    %cst_12 = arith.constant dense<0.000000e+00> : vector<4xf32>
    %14 = vector.multi_reduction <add>, %4, %cst_12 [1] : vector<4x200xf32> to vector<4xf32>
    %15 = vector.shape_cast %14 : vector<4xf32> to vector<4x1xf32>
    %16 = arith.addf %13, %15 : vector<4x1xf32>
    %c0_13 = arith.constant 0 : index
    %c0_14 = arith.constant 0 : index
    %c0_15 = arith.constant 0 : index
    %17 = vector.load %arg4[%c0_13, %c0_14, %c0_15] : memref<1x4x1xf32, #tpu.memory_space<vmem>>, vector<1x4x1xf32>
    %18 = vector.shape_cast %17 : vector<1x4x1xf32> to vector<4x1xf32>
    %19 = vector.shape_cast %16 : vector<4x1xf32> to vector<1x4x1xf32>
    tpu.vector_store %arg4[%c0_13, %c0_14, %c0_15], %19 {strides = array<i32>} : memref<1x4x1xf32, #tpu.memory_space<vmem>>, vector<1x4x1xf32>,
    return
  }
  func.func @transform_0(%arg0: i32, %arg1: i32) -> (i32, i32, i32) {
    %c0_i32 = arith.constant 0 : i32
    %c0_i32_0 = arith.constant 0 : i32
    return %arg0, %c0_i32, %arg1 : i32, i32, i32
  }
  func.func @transform_1(%arg0: i32, %arg1: i32) -> (i32, i32, i32) {
    %c0_i32 = arith.constant 0 : i32
    %c0_i32_0 = arith.constant 0 : i32
    %c0_i32_1 = arith.constant 0 : i32
    return %arg0, %c0_i32, %c0_i32_0 : i32, i32, i32
  }
  func.func @transform_2(%arg0: i32, %arg1: i32) -> (i32, i32, i32) {
    %c0_i32 = arith.constant 0 : i32
    %c0_i32_0 = arith.constant 0 : i32
    %c0_i32_1 = arith.constant 0 : i32
    return %arg0, %c0_i32, %c0_i32_0 : i32, i32, i32
  }
}

</mosaic_0001>

<bundles_post_ra>
// kernel: tpu_custom_call.1
= control target key start
LH: loop header
LB: loop body
LE: loop exit
PB: predicated region body
PF: predicated region fallthrough
CT: control target
= control target key end

     0   :  { %8 = vsyncpa [#allocation3], 0  ;;  %s778_s0 = inlined_call_operand.hbm [shape: f32[2,4,200], index: 0, kind: input, shape index: {}]   ;;  %s779_s1 = inlined_call_operand.hbm [shape: f32[2,4,4], index: 1, kind: output, shape index: {0}]   ;;  %s780_s2 = inlined_call_operand.vmem [shape: f32[2,4,1], index: 2, kind: output, shape index: {1}]  }
   0x1   :  { %10 = vsyncpa [#allocation3 + $0x1], 0 }
   0x2   :  { %11 = vsyncpa [#allocation4], 0 }
   0x3   :  { %13 = vsyncpa [#allocation4 + $0x1], 0  ;;  %s624_s9 = smov 0   ;;  %s626_s10 = smov 0  }
   0x4   :  { %s628_s11 = smov 0   ;;  %s630_s12 = smov 0  }
   0x5   :  { %s632_s13 = smov 0   ;;  %s634_s14 = smov 0  }
   0x6 LB: > { %s414_s15 = sadd.s32 4294967295, %s604_s14   ;;  %s415_s16 = sadd.s32 4294967294, %s604_s14   ;;  %s604_s14 = sphi %s634_s14, %s19_s14   ;;  %s600_s13 = sphi %s632_s13, %s792_s13   ;;  %s596_s12 = sphi %s630_s12, %s791_s12   ;;  %s592_s11 = sphi %s628_s11, %s790_s11   ;;  %s588_s10 = sphi %s626_s10, %s789_s10   ;;  %s584_s9 = sphi %s624_s9, %s788_s9  }
   0x7   : > { %s31_s17 = sadd.s32 1, %s600_s13  ;;  %s40_s18 = sadd.s32 1, %s592_s11 }
   0x8   : > { %p33_p0 = scmp.ge.s32.totalorder %s31_s17, 2  ;;  %p47_p1 = scmp.ne.s32.totalorder %s592_s11, %s588_s10 }
   0x9   : > { %p48_p2 = scmp.eq.s32.totalorder %s604_s14, 0  ;;  %p53_p3 = scmp.ne.s32.totalorder %s588_s10, %s584_s9 }
   0xa   : > { %s794_s17 = smov (%p33_p0, %s31_s17), 0  ;;  %p54_p5 = scmp.eq.s32.totalorder %s414_s15, 0 }
   0xb   : > { %p665_p4 = por %p48_p2, %p47_p1  ;;  %s35_s20 = ssub.s32 %s600_s13, %s794_s17 }
   0xc   : > { %p77_p6 = scmp.eq.s32.totalorder %s414_s15, 1  ;;  %p38_p7 = scmp.eq.s32.totalorder %s35_s20, 0 }
   0xd   : > { %p671_p8 = por %p54_p5, %p53_p3  ;;  %p83_p10 = scmp.eq.s32.totalorder %s415_s16, 1 }
   0xe   : > { %p675_p9 = por %p77_p6, %p47_p1  ;;  %p444_p13 = scmp.lt.s32.totalorder %s604_s14, 2 }
   0xf   : > { %s680_s23 = scalar_select %p38_p7, %s592_s11, %s40_s18  }
  0x10   : > { %p682_p11 = por %p83_p10, %p53_p3  ;;  %s129_s25 = sand.u32 1, %s592_s11  }
  0x11   : > { %s418_s26 = sshll.u32 %s129_s25, 3  ;;  %s431_s27 = sshll.u32 %s600_s13, 7 }
  0x12   : > { %s784_s24 = scalar_select %p682_p11, 1, 0 }
  0x13   : > { %s141_s30 = scalar_lea.hbm %s778_s0, %s431_s27  ;;  %s133_s3 = scalar_lea.vmem [#allocation2], %s418_s26 }
  0x14   : > { %s143_s4 = sshll.u32 %s133_s3, 4  ;;  %p695_p0 = pnand %p444_p13, %p665_p4  ;;  %s144_s4 = int_to_ptr.vmem [resolvable:$true] %s143_s4 }
  0x15   : > { %p421_p1 = scmp.ge.s32.totalorder %s604_s14, 1  ;;  %p148_p2 = scmp.lt.s32.totalorder %s604_s14, 3 }
  0x16   : > { %s130_s6 = scalar_lea.sflag [#allocation3], %s129_s25  ;;  %p498_p3 = pneg %p695_p0 }
  0x17   : > { %s509_s7 = scalar_lea.vmem %s144_s4, 128  ;;  %s606_s8 = smov [#allocation2]  }
  0x18   : > { %p510_p5 = scmp.ne.s32.totalorder %s144_s4, %s509_s7  ;;  %s514_s15 = sshll.u32 %s606_s8, 4  ;;  %s515_s15 = int_to_ptr.vmem [resolvable:$false] %s514_s15 }
  0x19   : > { %s516_s16 = scalar_lea.vmem %s515_s15, 256  ;;  %p517_p10 = scmp.lt.s32.totalorder %s144_s4, %s515_s15 }
  0x1a   : > { %p512_p6 = pnand %p510_p5, %p498_p3  ;;  %p518_p12 = scmp.lt.s32.totalorder %s516_s16, %s509_s7 }
  0x1c   : > { %p513_p7 = pneg %p512_p6  ;;  %p519_p4 = por %p518_p12, %p517_p10 }
  0x1e   : > { %p520_p13 = pnand %p519_p4, %p513_p7 }
  0x20   : > { %523 = shalt.err (!%p520_p13)
}
  0x21   : > { %439 = dma.hbm_to_vmem [thread:$0]  (!%p695_p0), %s141_s30, 128, %s144_s4, %s130_s6  }
  0x22   : > { %p149_p11 = pnand %p421_p1, %p148_p2 }
  0x23   : > { %s710_s18 = sand.u32 (!%p149_p11), 1, %s588_s10  }
  0x24   : > { %152 = sbr.rel (%p149_p11) target bundleno = 257 (0x101), region = 24  ;;  %s422_s19 = sshll.u32 (!%p149_p11), %s710_s18, 3 }
  0x25   : > { %s155_s20 = scalar_lea.sflag (!%p149_p11), [#allocation3], %s710_s18  ;;  %s158_s25 = scalar_lea.vmem (!%p149_p11), [#allocation2], %s422_s19 }
  0x29   : > { %575 = dma.done.wait (%p671_p8), %s155_s20, 128  }
  0x2a   : > { %577 = vsyncadd (%p671_p8), %s155_s20, 4294967168  ;;  %s423_s26 = sshll.u32 %s710_s18, 2  ;;  %vm192_vm0 = vcmask 27648   ;;  %v607_v0 = vmov 0.0   ;;  %vm278_vm1 = vcmask 1043456   ;;  %v196_v1 = vld [vmem:[%s158_s25] sm:$0xff] }
  0x2b   : > { %s719_s27 = scalar_lea.vmem [#allocation5], %s423_s26  ;;  %vm200_vm2 = vcmask 588800   ;;  %vm280_vm3 = vcmask 584704   ;;  %v199_v2 = vcombine.high %v196_v1, %v196_v1  ;;  %v279_v3 = vsel %vm278_vm1, %v196_v1, 0.0  ;;  %p184_p8 = scmp.lt.s32.totalorder %s596_s12, 1 }
  0x2c   : > { %193 = vst.msk [vmem:[%s719_s27] sm:$0xf] %vm192_vm0, %v607_v0  ;;  %vm194_vm4 = vcmask 3072   ;;  %s428_s4 = sshll.u32 %s596_s12, 6  ;;  %s306_s5 = sshll.u32 %s719_s27, 4  ;;  %s307_s5 = int_to_ptr.vmem [resolvable:$true] %s306_s5 }
  0x2d   : > { %425 = vmatprep.subr.msk.mxu0 %vm200_vm2, %v199_v2  ;;  %426 = vmatprep.mubr.msk.f32.mxu0 %vm200_vm2, %v199_v2  ;;  %v281_v4 = vsel %vm280_vm3, %v199_v2, 0.0  ;;  %s185_s21 = scalar_select %p184_p8, %s596_s12, 1 }
  0x2e   : > { %234 = vmatpush1.xpose.msra.mxu0 %v196_v1  ;;  %v282_v5 = vadd.f32 %v281_v4, %v279_v3  ;;  %s734_s8 = scalar_lea.hbm %s779_s1, %s428_s4  ;;  %s289_s15 = scalar_lea.sflag [#allocation4], %s710_s18 }
  0x2f   : > { %s424_s28 = sshll.u32 %s185_s21, 2  ;;  %s524_s16 = scalar_lea.vmem %s307_s5, 64 }
  0x30   : > { %283 = vadd.xlane.f32.xlu0 %v282_v5  ;;  %s187_s3 = scalar_lea.vmem %s780_s2, %s424_s28  ;;  %p525_p11 = scmp.ne.s32.totalorder %s307_s5, %s524_s16 }
  0x31   : > { %268 = vmatmul.mubr.f32.vlgmr.msra.gmra.mxu0 %v196_v1  ;;  %195 = vst.msk [vmem:[%s187_s3] sm:$0xf] %vm194_vm4, %v607_v0  ;;  %s608_s19 = smov [#allocation5]  }
  0x32   : > { %p526_p12 = pnand %p525_p11, %p675_p9  ;;  %s528_s12 = sshll.u32 %s608_s19, 4  ;;  %s529_s12 = int_to_ptr.vmem [resolvable:$false] %s528_s12 }
  0x33   : > { %v197_v9 = vld [vmem:[%s719_s27] sm:$0xf]  ;;  %s530_s20 = scalar_lea.vmem %s529_s12, 128  ;;  %p531_p1 = scmp.lt.s32.totalorder %s307_s5, %s529_s12 }
  0x34   : > { %p527_p0 = pneg %p526_p12  ;;  %p532_p2 = scmp.lt.s32.totalorder %s530_s20, %s524_s16 }
  0x36   : > { %p533_p3 = por %p532_p2, %p531_p1 }
  0x38   : > { %v276_v6 = vld [vmem:[%s187_s3] sm:$0xf]  ;;  %p534_p5 = pnand %p533_p3, %p527_p0 }
  0xb9   : > { %v284_v7 = vpop.xlane.xlu0 %283 }
  0xba   : > { %v285_v8 = vadd.f32 %v284_v7, %v276_v6 }
  0xbc   : > { %287 = vst.msk [vmem:[%s187_s3] sm:$0xf] %vm194_vm4, %v285_v8 }
  0xf1   : > { %v269_v10 = vpop.f32.mrf.mxu0 }
  0xf2   : > { %v273_v11 = vadd.f32 %v269_v10, %v197_v9 }
  0xf3   : > { %v271_v12 = vpop.f32.mrf.mxu0 }
  0xf4   : > { %275 = vst.msk [vmem:[%s719_s27] sm:$0xf] %vm192_vm0, %v273_v11 }
  0xf5   : > { %537 = shalt.err (!%p534_p5)
}
  0xf6   : > { %s538_s25 = scalar_lea.hbm %s734_s8, 64  ;;  %s542_s27 = scalar_lea.hbm %s779_s1, 128 }
  0xf7   : > { %p539_p6 = scmp.ne.s32.totalorder %s734_s8, %s538_s25  ;;  %p543_p4 = scmp.lt.s32.totalorder %s734_s8, %s779_s1 }
  0xf8   : > { %p544_p13 = scmp.lt.s32.totalorder %s542_s27, %s538_s25 }
  0xf9   : > { %p540_p7 = pnand %p539_p6, %p675_p9 }
  0xfa   : > { %p545_p8 = por %p544_p13, %p543_p4 }
  0xfb   : > { %p541_p10 = pneg %p540_p7 }
  0xfd   : > { %p546_p11 = pnand %p545_p8, %p541_p10 }
  0xff   : > { %549 = shalt.err (!%p546_p11)
}
 0x100   : > { %434 = dma.vmem_to_hbm [thread:$0]  (%p675_p9), %s307_s5, 64, %s734_s8, %s289_s15  }
 0x101 PF: > { %s321_s29 = sand.u32 1, %s584_s9   ;;  %p786_p12 = scmp.ne.s32.totalorder %s784_s24, 0 }
 0x102   : > { %p787_p0 = scmp.ge.s32.totalorder %s604_s14, 2  ;;  %s322_s30 = scalar_lea.sflag [#allocation4], %s321_s29 }
 0x104   : > { %p441_p1 = pnand %p787_p0, %p786_p12 }
 0x106   : > { %p442_p2 = pneg %p441_p1 }
 0x108   : > { %579 = dma.done.wait (%p442_p2), %s322_s30, 64  }
 0x109   : > { %581 = vsyncadd (%p442_p2), %s322_s30, 4294967232  ;;  %s19_s14 = sadd.s32 1, %s604_s14   ;;  %s788_s9 = smov %s588_s10 }
 0x10a   : > { %p16_p3 = scmp.ge.s32.totalorder %s19_s14, 4   ;;  %s789_s10 = smov %s592_s11 }
 0x10b   : > { %s790_s11 = smov %s680_s23  ;;  %s791_s12 = smov %s600_s13 }
 0x10c   : > { %s792_s13 = smov %s794_s17  ;;  %18 = sbr.rel (!%p16_p3) target bundleno = 6 (0x6), region = 85 }
 0x111   :  { %334 = vsyncpa [#allocation3], 1 }
 0x112   :  { %336 = vsyncpa [#allocation3 + $0x1], 1 }
 0x113   :  { %337 = vsyncpa [#allocation4], 1 }
 0x114   :  { %339 = vsyncpa [#allocation4 + $0x1], 1 }

</bundles_post_ra>
